<compile_context>
chip_gen: v6e
topology: v6e:2x2x1
jax: 0.10.0
libtpu: 0.0.40
codegen_flags: <defaults>
</compile_context>

<pallas_src>
import functools
import math

import numpy as np

import jax
import jax.numpy as jnp
from jax import lax
from jax.experimental import pallas as pl
from jax.experimental.pallas import tpu as pltpu

_LANE = 128


def _group_lasso_kernel(x_ref, init_ref, w_ref, scale_ref, o_ref, acc_ref,
                        *, d_total, d_tile, mask_d):
    k = pl.program_id(1)

    @pl.when(k == 0)
    def _():
        acc_ref[...] = jnp.zeros_like(acc_ref)

    # Upcast right after the load (v5e has no bf16 VPU path); accumulate in f32.
    x = x_ref[...].astype(jnp.float32)            # (TB, TD)
    init = init_ref[...].astype(jnp.float32)      # (1, TD), broadcasts over rows
    diff = x - init
    sq = diff * diff                              # VPU elementwise
    if mask_d:
        # Ragged last D tile: columns beyond d_total hold undefined VMEM data.
        col = lax.broadcasted_iota(jnp.int32, (1, d_tile), 1) + k * d_tile
        sq = jnp.where(col < d_total, sq, 0.0)
    # Per-group partial sum of squares on the MXU: (TB, TD) @ (TD, G) -> (TB, G).
    acc_ref[...] += jnp.dot(sq, w_ref[...], preferred_element_type=jnp.float32)

    @pl.when(k == pl.num_programs(1) - 1)
    def _():
        norms = jnp.sqrt(acc_ref[...])            # (TB, G)
        # Fold sqrt(len(g)) scaling + G-reduction + batch->lane transpose into
        # one MXU contraction: (1, G) . (TB, G) contracting on G -> (1, TB).
        o_ref[...] = lax.dot_general(
            scale_ref[...], norms,
            dimension_numbers=(((1,), (1,)), ((), ())),
            preferred_element_type=jnp.float32,
        )


def _vmem_budget():
    """Per-chip VMEM limit + tile budget (v7x has 64 MiB vs 128 MiB v5e/v6e)."""
    try:
        cap = int(getattr(pltpu.get_tpu_info(), "vmem_capacity_bytes", 0))
    except Exception:
        cap = 0
    if cap <= 0:
        cap = 64 * 1024 * 1024          # conservative fallback (v7x per-TC VMEM)
    vmem_limit = min(100 * 1024 * 1024, int(cap * 0.8))
    tile_budget = int(vmem_limit * 0.7)
    return vmem_limit, tile_budget


def _pick_tiles(B, D, G, itemsize, budget):
    """Pick (batch tile TB, dim tile TD, number of D tiles) under a VMEM budget
    counted in compute bytes (double-buffered x + f32 temporaries + W + scratch)."""

    def step_bytes(tb, td, n_d):
        w_bufs = 1 if n_d == 1 else 2
        b = 2 * tb * td * itemsize                # double-buffered x tiles
        b += 3 * tb * td * 4                      # f32 upcast / diff / sq temps
        b += w_bufs * td * (G * 4 + itemsize)     # W (+ init row)
        b += 2 * tb * G * 4                       # acc scratch + norms temp
        b += 2 * tb * 4 + G * 4                   # output block + scale
        return b

    single_batch = B < 256
    tb_min = B if single_batch else _LANE

    # --- D tile: keep full D unless even the smallest batch tile cannot fit.
    if step_bytes(tb_min, D, 1) <= budget:
        td = D
    else:
        per_col = 2 * tb_min * itemsize + 3 * tb_min * 4 + 2 * (G * 4 + itemsize)
        fixed = 2 * tb_min * G * 4 + 2 * tb_min * 4 + G * 4
        td = (max(budget - fixed, 0) // max(per_col, 1) // _LANE) * _LANE
        td = max(_LANE, min(td, max(_LANE, (D // _LANE) * _LANE)))
    n_d = -(-D // td)

    # --- batch tile.
    if single_batch:
        tb = B
    else:
        w_bufs = 1 if n_d == 1 else 2
        per_row = 2 * td * itemsize + 3 * td * 4 + 2 * G * 4 + 2 * 4
        fixed = w_bufs * td * (G * 4 + itemsize) + G * 4
        tb = max(budget - fixed, 0) // max(per_row, 1)
        # ~16 MiB per x tile keeps DMAs long without hogging VMEM; 4096-row cap.
        tb = min(tb, (16 * 1024 * 1024) // max(td * itemsize, 1), 4096)
        # At least 2 batch tiles so the "parallel" axis shards v7x's two TCs.
        tb = min(tb, max(_LANE, (B // 2 // _LANE) * _LANE))
        tb = max(_LANE, (tb // _LANE) * _LANE)
    return tb, td, n_d


@functools.lru_cache(maxsize=64)
def _group_constants(d_pad, groups_key):
    """(D_pad, G) membership matrix + (1, G) sqrt(len(g)) row, built once per
    (padded dim, groups) and kept on device across calls."""
    n_groups = len(groups_key)
    w_np = np.zeros((d_pad, n_groups), dtype=np.float32)
    scale_np = np.zeros((1, n_groups), dtype=np.float32)
    for j, g in enumerate(groups_key):
        # np.add.at keeps duplicate-index multiplicity, matching the reference
        # fancy-index gather semantics.
        np.add.at(w_np[:, j], np.asarray(g, dtype=np.int64), 1.0)
        scale_np[0, j] = math.sqrt(len(g))
    return jnp.asarray(w_np), jnp.asarray(scale_np)


def group_lasso_penalty(X, init_point, groups):
    """X: batch_shape x 1 x dim. Returns penalty of shape batch_shape."""
    if X.shape[-2] != 1:
        raise NotImplementedError("group-lasso has not been implemented for q>1 yet.")

    batch_shape = X.shape[:-2]
    dim = X.shape[-1]
    groups_key = tuple(tuple(int(i) for i in g) for g in groups)
    n_groups = len(groups_key)

    x2d = jnp.reshape(X, (-1, dim))                               # (B, D), native dtype
    B = x2d.shape[0]
    init2d = jnp.reshape(init_point, (1, dim)).astype(X.dtype)    # (1, D)

    itemsize = jnp.dtype(X.dtype).itemsize
    vmem_limit, tile_budget = _vmem_budget()
    tb, td, n_d = _pick_tiles(B, dim, n_groups, itemsize, tile_budget)
    d_pad = td * n_d                     # W zero-padded to the tiled extent
    nb = -(-B // tb)
    invariant = n_d == 1                 # init / W revisit the same block every step

    w, scale = _group_constants(d_pad, groups_key)

    def _spec(shape, index_map, *, inv, nbytes):
        # Single-buffer grid-invariant operands when it saves meaningful VMEM.
        if inv and nbytes >= (1 << 16):
            return pl.BlockSpec(shape, index_map, pipeline_mode=pl.Buffered(1))
        return pl.BlockSpec(shape, index_map)

    kernel = functools.partial(
        _group_lasso_kernel, d_total=dim, d_tile=td, mask_d=(dim % td != 0))

    cost = pl.CostEstimate(
        flops=2 * B * d_pad * n_groups + 2 * B * n_groups + 3 * B * dim,
        transcendentals=B * n_groups,
        bytes_accessed=(B * dim * itemsize + d_pad * n_groups * 4
                        + dim * itemsize + n_groups * 4 + B * 4),
    )

    out = pl.pallas_call(
        kernel,
        out_shape=jax.ShapeDtypeStruct((1, B), jnp.float32),
        grid_spec=pltpu.PrefetchScalarGridSpec(
            num_scalar_prefetch=0,
            grid=(nb, n_d),
            in_specs=[
                # x: tiled over (batch, dim); pipelined HBM->VMEM DMA. Ragged
                # trailing blocks are fine: work is per-row along batch and the
                # ragged D columns are masked in-kernel.
                pl.BlockSpec((tb, td), lambda i, k: (i, k)),
                # init / W: resident (single D tile) -> single-buffered if big.
                _spec((1, td), lambda i, k: (0, k),
                      inv=invariant, nbytes=td * itemsize),
                _spec((td, n_groups), lambda i, k: (k, 0),
                      inv=invariant, nbytes=td * n_groups * 4),
                # scale: fully grid-invariant (tiny).
                _spec((1, n_groups), lambda i, k: (0, 0),
                      inv=True, nbytes=n_groups * 4),
            ],
            # Lane-dense output row, revisited across the D (reduction) axis.
            out_specs=pl.BlockSpec((1, tb), lambda i, k: (0, i)),
            scratch_shapes=[pltpu.VMEM((tb, n_groups), jnp.float32)],
        ),
        compiler_params=pltpu.CompilerParams(
            dimension_semantics=("parallel", "arbitrary"),
            vmem_limit_bytes=vmem_limit,
        ),
        cost_estimate=cost,
    )(x2d, init2d, w, scale)

    # f32-accumulated result; downcast to X.dtype to match reference dtype.
    return jnp.reshape(out[0], batch_shape).astype(X.dtype)


def _reference(X, init_point, groups):
    diff = (jnp.squeeze(X, axis=-2).astype(jnp.float32)
            - jnp.reshape(init_point, (1, -1)).astype(jnp.float32))
    terms = [
        math.sqrt(len(g))
        * jnp.linalg.norm(diff[..., jnp.asarray(g, dtype=jnp.int32)], axis=-1)
        for g in groups
    ]
    return jnp.sum(jnp.stack(terms, axis=-1), axis=-1)


if __name__ == "__main__":
    key = jax.random.PRNGKey(0)
    k1, k2 = jax.random.split(key)

    B, dim = 2, 16
    groups = [[0, 1, 2, 3], [4, 5, 6], [7, 8, 9, 10, 11], [12, 13, 14, 15]]

    # Deterministic "parameters": the 1 x dim reference init_point.
    init_point = jax.random.normal(k1, (1, dim), dtype=jnp.float32)
    # Input: batch_shape x 1 x dim
    X = jax.random.normal(k2, (B, 1, dim), dtype=jnp.float32)

    out = group_lasso_penalty(X, init_point, groups)
    out = jax.block_until_ready(out)

    ref = _reference(X, init_point, groups)
    assert out.shape == (B,)
    assert jnp.allclose(out, ref.astype(out.dtype), atol=1e-5, rtol=1e-5)

    print("KERNEL_OK")
</pallas_src>

<mosaic_0001>
module attributes {stable_mosaic.version = 11 : i64} {
  func.func @_group_lasso_kernel(%arg0: i32, %arg1: i32, %arg2: memref<2x16xf32, #tpu.memory_space<vmem>>, %arg3: memref<1x16xf32, #tpu.memory_space<vmem>>, %arg4: memref<16x4xf32, #tpu.memory_space<vmem>>, %arg5: memref<1x4xf32, #tpu.memory_space<vmem>>, %arg6: memref<1x2xf32, #tpu.memory_space<vmem>>, %arg7: memref<2x4xf32, #tpu.memory_space<vmem>>) attributes {dimension_semantics = [#tpu.dimension_semantics<parallel>, #tpu.dimension_semantics<arbitrary>], iteration_bounds = array<i64: 1, 1>, scalar_prefetch = 0 : i64, scratch_operands = 1 : i64, tpu.core_type = #tpu.core_type<tc>, window_params = [{transform_indices = @transform_0, window_bounds = array<i64: 2, 16>}, {transform_indices = @transform_1, window_bounds = array<i64: 1, 16>}, {transform_indices = @transform_2, window_bounds = array<i64: 16, 4>}, {pipeline_mode = #tpu.pipeline_mode<synchronous>, transform_indices = @transform_3, window_bounds = array<i64: 1, 4>}, {transform_indices = @transform_4, window_bounds = array<i64: 1, 2>}]} {
    %c0_i32 = arith.constant 0 : i32
    %0 = arith.cmpi eq, %arg1, %c0_i32 : i32
    %1 = arith.extui %0 : i1 to i32
    %c0_i32_0 = arith.constant 0 : i32
    %2 = arith.cmpi ne, %1, %c0_i32_0 : i32
    scf.if %2 {
      %cst_12 = arith.constant 0.000000e+00 : f32
      %16 = vector.broadcast %cst_12 : f32 to vector<2x4xf32>
      %c0_13 = arith.constant 0 : index
      %c0_14 = arith.constant 0 : index
      %17 = vector.load %arg7[%c0_13, %c0_14] : memref<2x4xf32, #tpu.memory_space<vmem>>, vector<2x4xf32>
      tpu.vector_store %arg7[%c0_13, %c0_14], %16 {strides = array<i32>} : memref<2x4xf32, #tpu.memory_space<vmem>>, vector<2x4xf32>,
    } else {
    }
    %c0 = arith.constant 0 : index
    %c0_1 = arith.constant 0 : index
    %3 = vector.load %arg2[%c0, %c0_1] : memref<2x16xf32, #tpu.memory_space<vmem>>, vector<2x16xf32>
    %c0_2 = arith.constant 0 : index
    %c0_3 = arith.constant 0 : index
    %4 = vector.load %arg3[%c0_2, %c0_3] : memref<1x16xf32, #tpu.memory_space<vmem>>, vector<1x16xf32>
    %5 = vector.broadcast %4 : vector<1x16xf32> to vector<2x16xf32>
    %6 = arith.subf %3, %5 : vector<2x16xf32>
    %7 = arith.mulf %6, %6 : vector<2x16xf32>
    %c0_4 = arith.constant 0 : index
    %c0_5 = arith.constant 0 : index
    %8 = vector.load %arg7[%c0_4, %c0_5] : memref<2x4xf32, #tpu.memory_space<vmem>>, vector<2x4xf32>
    %c0_6 = arith.constant 0 : index
    %c0_7 = arith.constant 0 : index
    %9 = vector.load %arg4[%c0_6, %c0_7] : memref<16x4xf32, #tpu.memory_space<vmem>>, vector<16x4xf32>
    %cst = arith.constant dense<0.000000e+00> : vector<2x4xf32>
    %10 = tpu.matmul %7, %9, %cst {dimension_numbers = #tpu.dot_dimension_numbers<[1], [0], [0], [1], [0, 0, 1, 1], [], []>} : vector<2x16xf32>, vector<16x4xf32>, vector<2x4xf32> -> vector<2x4xf32>
    %11 = arith.addf %8, %10 : vector<2x4xf32>
    %c0_8 = arith.constant 0 : index
    %c0_9 = arith.constant 0 : index
    %12 = vector.load %arg7[%c0_8, %c0_9] : memref<2x4xf32, #tpu.memory_space<vmem>>, vector<2x4xf32>
    tpu.vector_store %arg7[%c0_8, %c0_9], %11 {strides = array<i32>} : memref<2x4xf32, #tpu.memory_space<vmem>>, vector<2x4xf32>,
    %c0_i32_10 = arith.constant 0 : i32
    %13 = arith.cmpi eq, %arg1, %c0_i32_10 : i32
    %14 = arith.extui %13 : i1 to i32
    %c0_i32_11 = arith.constant 0 : i32
    %15 = arith.cmpi ne, %14, %c0_i32_11 : i32
    scf.if %15 {
      %c0_12 = arith.constant 0 : index
      %c0_13 = arith.constant 0 : index
      %16 = vector.load %arg7[%c0_12, %c0_13] : memref<2x4xf32, #tpu.memory_space<vmem>>, vector<2x4xf32>
      %17 = math.sqrt %16 : vector<2x4xf32>
      %c0_14 = arith.constant 0 : index
      %c0_15 = arith.constant 0 : index
      %18 = vector.load %arg5[%c0_14, %c0_15] : memref<1x4xf32, #tpu.memory_space<vmem>>, vector<1x4xf32>
      %cst_16 = arith.constant dense<0.000000e+00> : vector<1x2xf32>
      %19 = tpu.matmul %18, %17, %cst_16 {dimension_numbers = #tpu.dot_dimension_numbers<[1], [1], [0], [0], [0, 0, 1, 0], [], []>} : vector<1x4xf32>, vector<2x4xf32>, vector<1x2xf32> -> vector<1x2xf32>
      %c0_17 = arith.constant 0 : index
      %c0_18 = arith.constant 0 : index
      %20 = vector.load %arg6[%c0_17, %c0_18] : memref<1x2xf32, #tpu.memory_space<vmem>>, vector<1x2xf32>
      tpu.vector_store %arg6[%c0_17, %c0_18], %19 {strides = array<i32>} : memref<1x2xf32, #tpu.memory_space<vmem>>, vector<1x2xf32>,
    } else {
    }
    return
  }
  func.func @transform_0(%arg0: i32, %arg1: i32) -> (i32, i32) {
    %c0_i32 = arith.constant 0 : i32
    return %arg0, %arg1 : i32, i32
  }
  func.func @transform_1(%arg0: i32, %arg1: i32) -> (i32, i32) {
    %c0_i32 = arith.constant 0 : i32
    %c0_i32_0 = arith.constant 0 : i32
    return %c0_i32, %arg1 : i32, i32
  }
  func.func @transform_2(%arg0: i32, %arg1: i32) -> (i32, i32) {
    %c0_i32 = arith.constant 0 : i32
    %c0_i32_0 = arith.constant 0 : i32
    return %arg1, %c0_i32 : i32, i32
  }
  func.func @transform_3(%arg0: i32, %arg1: i32) -> (i32, i32) {
    %c0_i32 = arith.constant 0 : i32
    %c0_i32_0 = arith.constant 0 : i32
    %c0_i32_1 = arith.constant 0 : i32
    return %c0_i32, %c0_i32_0 : i32, i32
  }
  func.func @transform_4(%arg0: i32, %arg1: i32) -> (i32, i32) {
    %c0_i32 = arith.constant 0 : i32
    %c0_i32_0 = arith.constant 0 : i32
    return %c0_i32, %arg0 : i32, i32
  }
}

</mosaic_0001>

<bundles_post_ra>
// kernel: tpu_custom_call.1
= control target key start
LH: loop header
LB: loop body
LE: loop exit
PB: predicated region body
PF: predicated region fallthrough
CT: control target
= control target key end

     0   :  { %v267_v2 = vmov 0.0   ;;  %vm268_vm0 = vmmov 0   ;;  %vm22_vm1 = vcmask 25600   ;;  %s315_s0 = inlined_call_operand.vmem [shape: f32[2,16], index: 0, kind: input, shape index: {}]   ;;  %s316_s1 = inlined_call_operand.vmem [shape: f32[1,16], index: 1, kind: input, shape index: {}]   ;;  %s317_s2 = inlined_call_operand.vmem [shape: f32[16,4], index: 2, kind: input, shape index: {}]   ;;  %s318_s3 = inlined_call_operand.vmem [shape: f32[1,4], index: 3, kind: input, shape index: {}]   ;;  %s319_s4 = inlined_call_operand.hbm [shape: f32[1,2], index: 4, kind: output, shape index: {}]  }
   0x1   :  { %v36_v0 = vld [vmem:[%s317_s2 + $0x8] sm:$0xff]  ;;  %v24_v1 = vld [vmem:[%s315_s0] sm:$0x3]  ;;  %228 = vmatprep.subr.mxu0 %v267_v2  ;;  %232 = vmatprep.mubr.msk.f32.mxu0 %vm268_vm0, %v267_v2 }
   0x2   :  { %v35_v3 = vld [vmem:[%s317_s2] sm:$0xff] }
   0x3   :  { %v219_v4 = vld [vmem:[%s316_s1] ss:$0 sm:$0xff] }
   0x4   :  { %9 = vsyncpa [#allocation4], 0  ;;  %229 = vmatpush3.msra.mxu0 %v36_v0  ;;  %v32_v5 = vsub.f32 %v24_v1, %v219_v4  ;;  %23 = vst.msk [vmem:[#allocation2] sm:$0x3] %vm22_vm1, %v267_v2  ;;  %235 = vmatprep.subr.mxu1 %v267_v2  ;;  %vm37_vm2 = vcmask 130048   ;;  %vm126_vm4 = vcmask 31744  }
   0x5   :  { %230 = vmatprep.subr.mxu0 %v267_v2  ;;  %237 = vmatprep.mubr.msk.f32.mxu1 %vm268_vm0, %v267_v2  ;;  %v125_v17 = vld [vmem:[%s318_s3] sm:$0x1]  ;;  %s269_s2 = smov [#allocation3]   ;;  %vm203_vm6 = vcmask 8192  }
   0x6   :  { %231 = vmatpush3.msra.mxu0 %v35_v3  ;;  %v33_v6 = vmul.f32 %v32_v5, %v32_v5  ;;  %s211_s23 = sshll.u32 %s269_s2, 4  ;;  %s212_s23 = int_to_ptr.vmem [resolvable:$true] %s211_s23 }
   0x7   :  { %s245_s24 = scalar_lea.vmem %s212_s23, 16  ;;  %s249_s25 = scalar_lea.vmem %s212_s23, 32 }
   0x8   :  { %233 = vmatmul.mubr.msk.f32.vlgmr.msra.gmra.mxu0 %vm37_vm2, %v33_v6  ;;  %p246_p0 = scmp.ne.s32.totalorder %s212_s23, %s245_s24  ;;  %p250_p1 = scmp.lt.s32.totalorder %s212_s23, %s212_s23 }
   0x9   :  { %p251_p2 = scmp.lt.s32.totalorder %s249_s25, %s245_s24 }
   0xb   :  { %v34_v7 = vld [vmem:[#allocation2] sm:$0x3]  ;;  %p252_p3 = por %p251_p2, %p250_p1 }
   0xd   :  { %p253_p4 = pnand %p252_p3, %p246_p0 }
  0xc8   :  { %v107_v8 = vpop.f32.mrf.mxu0 }
  0xc9   :  { %v111_v9 = vadd.f32 %v107_v8, %v34_v7 }
  0xca   :  { %v234_v10 = vpop.f32.mrf.mxu0 }
  0xcb   :  { %113 = vst.msk [vmem:[#allocation2] sm:$0x3] %vm22_vm1, %v111_v9 }
  0xd2   :  { %v117_v11 = vld [vmem:[#allocation2] sm:$0x3] }
  0xd3   :  { %243 = vrsqrt.f32 %v117_v11  ;;  %vm120_vm3 = vcmp.eq.f32.partialorder %v117_v11, inf  ;;  %v123_v14 = vand.u32 2147483648, %v117_v11  ;;  %vm122_vm5 = vcmp.eq.f32.partialorder %v117_v11, 0.0 }
  0xe0   :  { %v244_v12 = vpop.eup %243 }
  0xe1   :  { %v119_v13 = vmul.f32 %v244_v12, %v117_v11 }
  0xe3   :  { %v121_v15 = vsel %vm120_vm3, %v117_v11, %v119_v13 }
  0xe4   :  { %v124_v16 = vsel %vm122_vm5, %v123_v14, %v121_v15 }
  0xe5   :  { %236 = vmatpush3.xpose.msk.msra.mxu1 %vm126_vm4, %v124_v16 }
  0xe8   :  { %238 = vmatmul.mubr.msk.f32.vlgmr.msra.gmra.mxu1 %vm126_vm4, %v125_v17 }
 0x1a8   :  { %v199_v18 = vpop.f32.mrf.mxu1 }
 0x1a9   :  { %204 = vst.msk [vmem:[#allocation3] sm:$0x1] %vm203_vm6, %v199_v18 }
 0x1aa   :  { %v239_v19 = vpop.f32.mrf.mxu1 }
 0x1ab   :  { %256 = shalt.err (!%p253_p4)
}
 0x1ac   :  { %214 = dma.vmem_to_hbm [thread:$0]  %s212_s23, 16, %s319_s4, [#allocation4]  }
 0x1ad   :  { %265 = dma.done.wait [#allocation4], 16  }
 0x1ae   :  { %266 = vsyncadd [#allocation4], 4294967280 }
 0x1af   :  { %218 = vsyncpa [#allocation4], 1 }

</bundles_post_ra>
